<compile_context>
chip_gen: v6e
topology: v6e:2x2x1
jax: 0.10.0
libtpu: 0.0.40
codegen_flags: <defaults>
</compile_context>

<pallas_src>
import functools

import jax
import jax.numpy as jnp
from jax.experimental import pallas as pl
from jax.experimental.pallas import tpu as pltpu


def _dw_causal_conv_kernel(x_ref, w_ref, b_ref, o_ref, *, kernel_size):
    # x_ref: (1, tc, N)  input tile   (channels on sublanes, sequence on lanes)
    # w_ref: (tc, K)     per-channel depthwise taps
    # b_ref: (tc, 1)     per-channel bias
    # o_ref: (1, N, tc)  output tile  (sequence on sublanes, channels on lanes)
    x = x_ref[0].astype(jnp.float32)                        # (tc, N)
    tc, n = x.shape
    col = jax.lax.broadcasted_iota(jnp.int32, (tc, n), 1)   # lane (time) index

    # out[c, t] = bias[c] + sum_k w[c, k] * x[c, t - (K-1-k)]   (zero for negative time)
    acc = jnp.broadcast_to(b_ref[...].astype(jnp.float32), (tc, n))
    for k in range(kernel_size):
        shift = kernel_size - 1 - k
        if shift == 0:
            xs = x
        else:
            # XLU lane rotation instead of unaligned lane-offset slices (which would
            # materialize extra VMEM copies per tap): xs[:, t] = x[:, t - shift].
            xs = pltpu.roll(x, shift=shift, axis=1)
            xs = jnp.where(col >= shift, xs, 0.0)           # zero the wrapped columns
        acc = acc + w_ref[:, k:k + 1].astype(jnp.float32) * xs

    # In-kernel transpose (XLU) so the stored tile is lane-dense along channels.
    o_ref[0] = jnp.transpose(acc).astype(o_ref.dtype)       # (N, tc)


def _pick_channel_tile(C, N, itemsize):
    """Largest channel tile that (a) divides C, (b) keeps the output block lane-dense
    (multiple of 128, or the full C extent), and (c) keeps a (tc, N) slab around <= 2 MiB
    so double-buffered in/out blocks plus f32 temporaries stay well under scoped VMEM."""
    slab_budget = 2 * 1024 * 1024
    bytes_per_row = N * max(itemsize, 4)  # f32 working set dominates

    def fits(tc):
        return tc * bytes_per_row <= slab_budget

    if fits(C) or C % 128 != 0:
        # Whole channel axis in one block (block == full extent is always legal).
        return C
    best = 128
    tc = 128
    while tc <= C:
        if C % tc == 0 and fits(tc):
            best = tc
        tc += 128
    return best


def spatial_depthwise_per_head_conv(x, weight, bias, *, heads, head_dim, kernel_size=3,
                                    channel_tile=None):
    """x: [B, H*D, N], weight: [H*D, K], bias: [H*D] -> [N, B, H, D] (PyTorch forward)."""
    B, C, N = x.shape
    assert C == heads * head_dim
    assert weight.shape == (C, kernel_size)
    assert bias.shape == (C,)

    itemsize = x.dtype.itemsize
    tc = _pick_channel_tile(C, N, itemsize) if channel_tile is None else channel_tile
    assert C % tc == 0 and (tc == C or tc % 128 == 0), (
        "channel tile must divide C and keep output blocks lane-dense")

    bias2d = bias.reshape(C, 1)
    kernel = functools.partial(_dw_causal_conv_kernel, kernel_size=kernel_size)

    cost = pl.CostEstimate(
        flops=2 * B * C * N * kernel_size + B * C * N,
        transcendentals=0,
        bytes_accessed=(B * C * N) * itemsize + (B * N * C) * itemsize
        + C * kernel_size * weight.dtype.itemsize + C * bias.dtype.itemsize,
    )

    out_bnc = pl.pallas_call(
        kernel,
        out_shape=jax.ShapeDtypeStruct((B, N, C), x.dtype),
        grid_spec=pltpu.PrefetchScalarGridSpec(
            num_scalar_prefetch=0,
            grid=(B, C // tc),
            in_specs=[
                pl.BlockSpec((1, tc, N), lambda b, c: (b, c, 0)),
                pl.BlockSpec((tc, kernel_size), lambda b, c: (c, 0)),
                pl.BlockSpec((tc, 1), lambda b, c: (c, 0)),
            ],
            out_specs=pl.BlockSpec((1, N, tc), lambda b, c: (b, 0, c)),
        ),
        compiler_params=pltpu.CompilerParams(
            dimension_semantics=("parallel", "parallel"),
            vmem_limit_bytes=32 * 1024 * 1024,
        ),
        cost_estimate=cost,
    )(x, weight, bias2d)

    # [B, N, C] -> [N, B, C] -> [N, B, H, D].
    # The swapaxes only permutes the two leading dims (the channel axis stays minor, i.e.
    # lane-dense), and splitting C -> (H, D) on the minor dim is a free reshape.
    # TODO(synk): if the consumer can take [B, N, C] / [B, N, H, D] directly, drop the
    # swapaxes and this epilogue becomes zero-copy.
    return jnp.swapaxes(out_bnc, 0, 1).reshape(N, B, heads, head_dim)


def _reference(x, weight, bias, *, heads, head_dim, kernel_size):
    """Pure-JAX reference mirroring the PyTorch forward (f32 accumulation)."""
    B, C, N = x.shape
    xf = x.astype(jnp.float32)
    x_pad = jnp.pad(xf, ((0, 0), (0, 0), (kernel_size - 1, 0)))
    out = bias.astype(jnp.float32)[None, :, None]
    for k in range(kernel_size):
        out = out + weight.astype(jnp.float32)[None, :, k:k + 1] * x_pad[:, :, k:k + N]
    out = out.astype(x.dtype)
    return jnp.transpose(out.reshape(B, heads, head_dim, N), (3, 0, 1, 2))


if __name__ == "__main__":
    key = jax.random.PRNGKey(0)
    kernel_size = 3

    # (B, heads, head_dim, N, dtype, channel_tile, atol)
    configs = [
        (2, 2, 64, 128, jnp.float32, None, 1e-5),   # C = 128, single channel tile
        (2, 4, 64, 128, jnp.float32, 128, 1e-5),    # C = 256, tiled into 2 lane-dense tiles
        (2, 2, 64, 128, jnp.bfloat16, None, 5e-2),  # bf16 storage, f32 accumulation
    ]

    for idx, (B, heads, head_dim, N, dtype, ctile, atol) in enumerate(configs):
        C = heads * head_dim
        kx, kw, kb, key = jax.random.split(key, 4)

        x = jax.random.normal(kx, (B, C, N), dtype=jnp.float32).astype(dtype)
        # Conv1d(groups=C) init bound: fan_in = kernel_size.
        bound = 1.0 / (kernel_size ** 0.5)
        weight = jax.random.uniform(kw, (C, kernel_size), jnp.float32, -bound, bound).astype(dtype)
        bias = jax.random.uniform(kb, (C,), jnp.float32, -bound, bound).astype(dtype)

        out = spatial_depthwise_per_head_conv(
            x, weight, bias, heads=heads, head_dim=head_dim,
            kernel_size=kernel_size, channel_tile=ctile)
        out = jax.block_until_ready(out)

        ref = _reference(x, weight, bias, heads=heads, head_dim=head_dim,
                         kernel_size=kernel_size)
        assert out.shape == (N, B, heads, head_dim), f"config {idx}: bad shape {out.shape}"
        err = jnp.max(jnp.abs(out.astype(jnp.float32) - ref.astype(jnp.float32)))
        assert float(err) <= atol, f"config {idx}: max abs err {float(err)} > {atol}"

    print("KERNEL_OK")
</pallas_src>

<mosaic_0001>
module attributes {stable_mosaic.version = 11 : i64} {
  func.func @_dw_causal_conv_kernel(%arg0: i32, %arg1: i32, %arg2: memref<1x128x128xf32, #tpu.memory_space<vmem>>, %arg3: memref<128x3xf32, #tpu.memory_space<vmem>>, %arg4: memref<128x1xf32, #tpu.memory_space<vmem>>, %arg5: memref<1x128x128xf32, #tpu.memory_space<vmem>>) attributes {dimension_semantics = [#tpu.dimension_semantics<parallel>, #tpu.dimension_semantics<parallel>], iteration_bounds = array<i64: 2, 1>, scalar_prefetch = 0 : i64, scratch_operands = 0 : i64, tpu.core_type = #tpu.core_type<tc>, window_params = [{transform_indices = @transform_0, window_bounds = array<i64: 1, 128, 128>}, {transform_indices = @transform_1, window_bounds = array<i64: 128, 3>}, {transform_indices = @transform_2, window_bounds = array<i64: 128, 1>}, {transform_indices = @transform_3, window_bounds = array<i64: 1, 128, 128>}]} {
    %c0 = arith.constant 0 : index
    %c0_0 = arith.constant 0 : index
    %c0_1 = arith.constant 0 : index
    %0 = vector.load %arg2[%c0, %c0_0, %c0_1] : memref<1x128x128xf32, #tpu.memory_space<vmem>>, vector<1x128x128xf32>
    %1 = vector.shape_cast %0 : vector<1x128x128xf32> to vector<128x128xf32>
    %2 = tpu.iota {dimensions = array<i32: 1>} : vector<128x128xi32>
    %c0_2 = arith.constant 0 : index
    %c0_3 = arith.constant 0 : index
    %3 = vector.load %arg4[%c0_2, %c0_3] : memref<128x1xf32, #tpu.memory_space<vmem>>, vector<128x1xf32>
    %4 = vector.shape_cast %3 : vector<128x1xf32> to vector<128x1xf32>
    %5 = vector.broadcast %4 : vector<128x1xf32> to vector<128x128xf32>
    %c2_i32 = arith.constant 2 : i32
    %6 = tpu.dynamic_rotate %1 by %c2_i32 dim 1 : vector<128x128xf32>, i32 -> vector<128x128xf32>
    %c2_i32_4 = arith.constant 2 : i32
    %7 = vector.broadcast %c2_i32_4 : i32 to vector<128x128xi32>
    %8 = arith.cmpi sge, %2, %7 : vector<128x128xi32>
    %cst = arith.constant 0.000000e+00 : f32
    %9 = vector.broadcast %cst : f32 to vector<128x128xf32>
    %10 = arith.select %8, %6, %9 : vector<128x128xi1>, vector<128x128xf32>
    %c0_5 = arith.constant 0 : index
    %c0_6 = arith.constant 0 : index
    %11 = vector.load %arg3[%c0_5, %c0_6] : memref<128x3xf32, #tpu.memory_space<vmem>>, vector<128x1xf32>
    %12 = vector.broadcast %11 : vector<128x1xf32> to vector<128x128xf32>
    %13 = arith.mulf %12, %10 : vector<128x128xf32>
    %14 = arith.addf %5, %13 : vector<128x128xf32>
    %c1_i32 = arith.constant 1 : i32
    %15 = tpu.dynamic_rotate %1 by %c1_i32 dim 1 : vector<128x128xf32>, i32 -> vector<128x128xf32>
    %c1_i32_7 = arith.constant 1 : i32
    %16 = vector.broadcast %c1_i32_7 : i32 to vector<128x128xi32>
    %17 = arith.cmpi sge, %2, %16 : vector<128x128xi32>
    %cst_8 = arith.constant 0.000000e+00 : f32
    %18 = vector.broadcast %cst_8 : f32 to vector<128x128xf32>
    %19 = arith.select %17, %15, %18 : vector<128x128xi1>, vector<128x128xf32>
    %c0_9 = arith.constant 0 : index
    %c1 = arith.constant 1 : index
    %20 = vector.load %arg3[%c0_9, %c1] : memref<128x3xf32, #tpu.memory_space<vmem>>, vector<128x1xf32>
    %21 = vector.broadcast %20 : vector<128x1xf32> to vector<128x128xf32>
    %22 = arith.mulf %21, %19 : vector<128x128xf32>
    %23 = arith.addf %14, %22 : vector<128x128xf32>
    %c0_10 = arith.constant 0 : index
    %c2 = arith.constant 2 : index
    %24 = vector.load %arg3[%c0_10, %c2] : memref<128x3xf32, #tpu.memory_space<vmem>>, vector<128x1xf32>
    %25 = vector.broadcast %24 : vector<128x1xf32> to vector<128x128xf32>
    %26 = arith.mulf %25, %1 : vector<128x128xf32>
    %27 = arith.addf %23, %26 : vector<128x128xf32>
    %28 = tpu.transpose %27, [1, 0] : vector<128x128xf32> -> vector<128x128xf32>
    %c0_11 = arith.constant 0 : index
    %c0_12 = arith.constant 0 : index
    %c0_13 = arith.constant 0 : index
    %29 = vector.load %arg5[%c0_11, %c0_12, %c0_13] : memref<1x128x128xf32, #tpu.memory_space<vmem>>, vector<1x128x128xf32>
    %30 = vector.shape_cast %29 : vector<1x128x128xf32> to vector<128x128xf32>
    %31 = vector.shape_cast %28 : vector<128x128xf32> to vector<1x128x128xf32>
    tpu.vector_store %arg5[%c0_11, %c0_12, %c0_13], %31 {strides = array<i32>} : memref<1x128x128xf32, #tpu.memory_space<vmem>>, vector<1x128x128xf32>,
    return
  }
  func.func @transform_0(%arg0: i32, %arg1: i32) -> (i32, i32, i32) {
    %c0_i32 = arith.constant 0 : i32
    %c0_i32_0 = arith.constant 0 : i32
    return %arg0, %arg1, %c0_i32 : i32, i32, i32
  }
  func.func @transform_1(%arg0: i32, %arg1: i32) -> (i32, i32) {
    %c0_i32 = arith.constant 0 : i32
    %c0_i32_0 = arith.constant 0 : i32
    return %arg1, %c0_i32 : i32, i32
  }
  func.func @transform_2(%arg0: i32, %arg1: i32) -> (i32, i32) {
    %c0_i32 = arith.constant 0 : i32
    %c0_i32_0 = arith.constant 0 : i32
    return %arg1, %c0_i32 : i32, i32
  }
  func.func @transform_3(%arg0: i32, %arg1: i32) -> (i32, i32, i32) {
    %c0_i32 = arith.constant 0 : i32
    %c0_i32_0 = arith.constant 0 : i32
    return %arg0, %c0_i32, %arg1 : i32, i32, i32
  }
}

</mosaic_0001>

<bundles_post_ra>
// kernel: tpu_custom_call.1
= control target key start
LH: loop header
LB: loop body
LE: loop exit
PB: predicated region body
PF: predicated region fallthrough
CT: control target
= control target key end

     0   :  { %8 = vsyncpa [#allocation3], 0  ;;  %s1740_s0 = inlined_call_operand.vmem [shape: f32[2,128,128], index: 0, kind: input, shape index: {}]   ;;  %s1741_s1 = inlined_call_operand.vmem [shape: f32[128,3], index: 1, kind: input, shape index: {}]   ;;  %s1742_s2 = inlined_call_operand.vmem [shape: f32[128,1], index: 2, kind: input, shape index: {}]   ;;  %s1743_s3 = inlined_call_operand.hbm [shape: f32[2,128,128], index: 3, kind: output, shape index: {}]  }
   0x1   :  { %10 = vsyncpa [#allocation3 + $0x1], 0  ;;  %s1139_s12 = smov 0   ;;  %s1141_s13 = smov 0  }
   0x2   :  { %s1143_s14 = smov 0   ;;  %s1145_s15 = smov 0  }
   0x3   :  { %s1147_s16 = smov 0   ;;  %s1149_s17 = smov 0  }
   0x4 LB: > { %s946_s18 = sadd.s32 4294967295, %s1109_s17   ;;  %s947_s19 = sadd.s32 4294967294, %s1109_s17   ;;  %s1109_s17 = sphi %s1149_s17, %s16_s17   ;;  %s1105_s16 = sphi %s1147_s16, %s1753_s16   ;;  %s1101_s15 = sphi %s1145_s15, %s1752_s15   ;;  %s1097_s14 = sphi %s1143_s14, %s1751_s14   ;;  %s1093_s13 = sphi %s1141_s13, %s1750_s13   ;;  %s1089_s12 = sphi %s1139_s12, %s1749_s12  }
   0x5   : > { %s28_s20 = sadd.s32 1, %s1105_s16  ;;  %s117_s21 = sadd.s32 1, %s1097_s14 }
   0x6   : > { %p30_p0 = scmp.ge.s32.totalorder %s28_s20, 2  ;;  %p127_p1 = scmp.ne.s32.totalorder %s1097_s14, %s1093_s13 }
   0x7   : > { %p128_p2 = scmp.eq.s32.totalorder %s946_s18, 1  ;;  %p133_p3 = scmp.ne.s32.totalorder %s1093_s13, %s1089_s12 }
   0x8   : > { %s1755_s20 = smov (%p30_p0, %s28_s20), 0  ;;  %p134_p5 = scmp.eq.s32.totalorder %s947_s19, 1 }
   0x9   : > { %p1179_p4 = por %p128_p2, %p127_p1  ;;  %s112_s23 = ssub.s32 %s1105_s16, %s1755_s20 }
   0xa   : > { %p952_p6 = scmp.ge.s32.totalorder %s1109_s17, 1  ;;  %p115_p7 = scmp.eq.s32.totalorder %s112_s23, 0 }
   0xb   : > { %p1186_p8 = por %p134_p5, %p133_p3  ;;  %p183_p9 = scmp.lt.s32.totalorder %s1109_s17, 3 }
   0xc   : > { %s1192_s25 = scalar_select %p115_p7, %s1097_s14, %s117_s21  }
   0xd   : > { %p184_p10 = pnand %p952_p6, %p183_p9 }
   0xf   : > { %187 = sbr.rel (%p184_p10) target bundleno = 484 (0x1e4), region = 32 }
  0x14   : > { %v263_v0 = vld [vmem:[%s1742_s2 + $0x10] sm:$0xff]  ;;  %v261_v1 = vld [vmem:[%s1742_s2] sm:$0xff]  ;;  %v1111_v2 = vmov 0   ;;  %v264_v3 = vld [vmem:[%s1742_s2 + $0x18] sm:$0xff]  ;;  %p222_p11 = scmp.lt.s32.totalorder %s1101_s15, 1  ;;  %s1112_s29 = smov 2  }
  0x15   : > { %1026 = vset.pattern.permute.xlu1 %v1111_v2  ;;  %1025 = vset.pattern.permute.xlu0 %v1111_v2  ;;  %v262_v4 = vld [vmem:[%s1742_s2 + $0x8] sm:$0xff]  ;;  %v265_v6 = vld [vmem:[%s1742_s2 + $0x20] sm:$0xff]  ;;  %v268_v7 = vld [vmem:[%s1742_s2 + $0x38] sm:$0xff]  ;;  %v1114_v49 = vmov 1   ;;  %v1115_v56 = vmov 2   ;;  %s962_s5 = sshll.u32 %s1101_s15, 11 }
  0x16   : > { %289 = vperm.xlu1 %1026, %v263_v0   ;;  %279 = vperm.xlu0 %1025, %v261_v1   ;;  %v266_v5 = vld [vmem:[%s1742_s2 + $0x28] sm:$0xff]  ;;  %v267_v8 = vld [vmem:[%s1742_s2 + $0x30] sm:$0xff]  ;;  %v269_v10 = vld [vmem:[%s1742_s2 + $0x40] sm:$0xff]  ;;  %s223_s6 = scalar_select %p222_p11, %s1101_s15, 1 }
  0x17   : > { %v270_v9 = vld [vmem:[%s1742_s2 + $0x48] sm:$0xff]  ;;  %v272_v11 = vld [vmem:[%s1742_s2 + $0x58] sm:$0xff]  ;;  %v271_v12 = vld [vmem:[%s1742_s2 + $0x50] sm:$0xff]  ;;  %s1688_s9 = scalar_lea.hbm %s1743_s3, %s962_s5  ;;  %s1116_s15 = smov [#allocation2]  }
  0x18   : > { %v274_v13 = vld [vmem:[%s1742_s2 + $0x68] sm:$0xff]  ;;  %v273_v14 = vld [vmem:[%s1742_s2 + $0x60] sm:$0xff]  ;;  %s961_s11 = sshll.u32 %s223_s6, 7  ;;  %v276_v15 = vld [vmem:[%s1742_s2 + $0x78] sm:$0xff]  ;;  %s1037_s18 = sshll.u32 %s1116_s15, 4  ;;  %s1038_s18 = int_to_ptr.vmem [resolvable:$false] %s1037_s18 }
  0x19   : > { %v275_v16 = vld [vmem:[%s1742_s2 + $0x70] sm:$0xff]  ;;  %s1247_s28 = scalar_lea.vmem %s1740_s0, %s961_s11  ;;  %v1316_v33 = vld [vmem:[%s1741_s1 + $0x8] sm:$0xff]  ;;  %v406_v34 = vld [vmem:[%s1741_s1] sm:$0xff]  ;;  %s1039_s19 = scalar_lea.vmem %s1038_s18, 4096 }
  0x1a   : > { %294 = vperm.xlu1 %1026, %v264_v3   ;;  %284 = vperm.xlu0 %1025, %v262_v4   ;;  %v1250_v17 = vld [vmem:[%s1247_s28 + $0x8] sm:$0xff]  ;;  %v1253_v18 = vld [vmem:[%s1247_s28] sm:$0xff]  ;;  %v1258_v19 = vld [vmem:[%s1247_s28 + $0x18] sm:$0xff] }
  0x1b   : > { %v1261_v20 = vld [vmem:[%s1247_s28 + $0x10] sm:$0xff]  ;;  %v1266_v21 = vld [vmem:[%s1247_s28 + $0x28] sm:$0xff]  ;;  %v1269_v22 = vld [vmem:[%s1247_s28 + $0x20] sm:$0xff] }
  0x1c   : > { %v1274_v23 = vld [vmem:[%s1247_s28 + $0x38] sm:$0xff]  ;;  %v1277_v24 = vld [vmem:[%s1247_s28 + $0x30] sm:$0xff]  ;;  %v1282_v25 = vld [vmem:[%s1247_s28 + $0x48] sm:$0xff] }
  0x1d   : > { %v1285_v26 = vld [vmem:[%s1247_s28 + $0x40] sm:$0xff]  ;;  %v1290_v27 = vld [vmem:[%s1247_s28 + $0x58] sm:$0xff]  ;;  %v1293_v28 = vld [vmem:[%s1247_s28 + $0x50] sm:$0xff] }
  0x1e   : > { %304 = vperm.xlu1 %1026, %v266_v5   ;;  %299 = vperm.xlu0 %1025, %v265_v6   ;;  %v1298_v29 = vld [vmem:[%s1247_s28 + $0x68] sm:$0xff]  ;;  %v1301_v30 = vld [vmem:[%s1247_s28 + $0x60] sm:$0xff]  ;;  %v1306_v31 = vld [vmem:[%s1247_s28 + $0x78] sm:$0xff] }
  0x1f   : > { %1747 = vst [vmem:[#allocation5_spill] sm:$0xff] %v1306_v31  ;;  %v1309_v32 = vld [vmem:[%s1247_s28 + $0x70] sm:$0xff]  ;;  %v1325_v35 = vld [vmem:[%s1741_s1 + $0x18] sm:$0xff]  ;;  %v1334_v37 = vld [vmem:[%s1741_s1 + $0x28] sm:$0xff]  ;;  %s1113_s28 = smov 1  }
  0x20   : > { %v408_v36 = vld [vmem:[%s1741_s1 + $0x10] sm:$0xff]  ;;  %v1339_v38 = vld [vmem:[%s1741_s1 + $0x20] sm:$0xff]  ;;  %v1346_v39 = vld [vmem:[%s1741_s1 + $0x38] sm:$0xff] }
  0x21   : > { %v1351_v40 = vld [vmem:[%s1741_s1 + $0x30] sm:$0xff]  ;;  %v1358_v41 = vld [vmem:[%s1741_s1 + $0x48] sm:$0xff]  ;;  %v1363_v42 = vld [vmem:[%s1741_s1 + $0x40] sm:$0xff] }
  0x22   : > { %314 = vperm.xlu1 %1026, %v268_v7   ;;  %309 = vperm.xlu0 %1025, %v267_v8   ;;  %v1370_v43 = vld [vmem:[%s1741_s1 + $0x58] sm:$0xff]  ;;  %v1375_v44 = vld [vmem:[%s1741_s1 + $0x50] sm:$0xff]  ;;  %v1382_v45 = vld [vmem:[%s1741_s1 + $0x68] sm:$0xff] }
  0x23   : > { %v1387_v46 = vld [vmem:[%s1741_s1 + $0x60] sm:$0xff]  ;;  %v1394_v47 = vld [vmem:[%s1741_s1 + $0x78] sm:$0xff]  ;;  %v1399_v48 = vld [vmem:[%s1741_s1 + $0x70] sm:$0xff] }
  0x26   : > { %324 = vperm.xlu1 %1026, %v270_v9   ;;  %319 = vperm.xlu0 %1025, %v269_v10  }
  0x2a   : > { %334 = vperm.xlu1 %1026, %v272_v11   ;;  %329 = vperm.xlu0 %1025, %v271_v12  }
  0x2e   : > { %344 = vperm.xlu1 %1026, %v274_v13   ;;  %339 = vperm.xlu0 %1025, %v273_v14  }
  0x32   : > { %354 = vperm.xlu1 %1026, %v276_v15   ;;  %349 = vperm.xlu0 %1025, %v275_v16   ;;  %v259_v15 = vlaneseq }
  0x36   : > { %359 = vrot.lane.b32.xlu1 %v1250_v17, %s1112_s29  ;;  %357 = vrot.lane.b32.xlu0 %v1253_v18, %s1112_s29 }
  0x3a   : > { %363 = vrot.lane.b32.xlu1 %v1258_v19, %s1112_s29  ;;  %361 = vrot.lane.b32.xlu0 %v1261_v20, %s1112_s29 }
  0x3e   : > { %367 = vrot.lane.b32.xlu1 %v1266_v21, %s1112_s29  ;;  %365 = vrot.lane.b32.xlu0 %v1269_v22, %s1112_s29 }
  0x42   : > { %371 = vrot.lane.b32.xlu1 %v1274_v23, %s1112_s29  ;;  %369 = vrot.lane.b32.xlu0 %v1277_v24, %s1112_s29 }
  0x46   : > { %375 = vrot.lane.b32.xlu1 %v1282_v25, %s1112_s29  ;;  %373 = vrot.lane.b32.xlu0 %v1285_v26, %s1112_s29 }
  0x4a   : > { %379 = vrot.lane.b32.xlu1 %v1290_v27, %s1112_s29  ;;  %377 = vrot.lane.b32.xlu0 %v1293_v28, %s1112_s29 }
  0x4e   : > { %383 = vrot.lane.b32.xlu1 %v1298_v29, %s1112_s29  ;;  %381 = vrot.lane.b32.xlu0 %v1301_v30, %s1112_s29 }
  0x52   : > { %387 = vrot.lane.b32.xlu1 %v1306_v31, %s1112_s29  ;;  %385 = vrot.lane.b32.xlu0 %v1309_v32, %s1112_s29  ;;  %s218_s29 = sand.u32 1, %s1093_s13  }
  0x53   : > { %s953_s30 = sshll.u32 %s218_s29, 7  ;;  %s1695_s10 = scalar_lea.sflag [#allocation3], %s218_s29 }
  0x54   : > { %s1666_s4 = scalar_lea.vmem [#allocation2], %s953_s30 }
  0x55   : > { %s838_s6 = sshll.u32 %s1666_s4, 4  ;;  %s1690_s6 = int_to_ptr.vmem [resolvable:$true] %s838_s6 }
  0x56   : > { %429 = vperm.xlu1 %1026, %v1316_v33   ;;  %424 = vperm.xlu0 %1025, %v406_v34   ;;  %s1033_s11 = scalar_lea.vmem %s1690_s6, 2048  ;;  %p1040_p1 = scmp.lt.s32.totalorder %s1690_s6, %s1038_s18 }
  0x57   : > { %p1034_p12 = scmp.ne.s32.totalorder %s1690_s6, %s1033_s11  ;;  %p1041_p2 = scmp.lt.s32.totalorder %s1039_s19, %s1033_s11 }
  0x59   : > { %p1035_p13 = pnand %p1034_p12, %p1179_p4  ;;  %p1042_p3 = por %p1041_p2, %p1040_p1 }
  0x5a   : > { %439 = vperm.xlu1 %1026, %v1325_v35   ;;  %434 = vperm.xlu0 %1025, %v408_v36  }
  0x5b   : > { %p1036_p0 = pneg %p1035_p13 }
  0x5d   : > { %p1043_p5 = pnand %p1042_p3, %p1036_p0 }
  0x5e   : > { %449 = vperm.xlu1 %1026, %v1334_v37   ;;  %444 = vperm.xlu0 %1025, %v1339_v38  }
  0x62   : > { %459 = vperm.xlu1 %1026, %v1346_v39   ;;  %454 = vperm.xlu0 %1025, %v1351_v40  }
  0x66   : > { %469 = vperm.xlu1 %1026, %v1358_v41   ;;  %464 = vperm.xlu0 %1025, %v1363_v42  }
  0x6a   : > { %479 = vperm.xlu1 %1026, %v1370_v43   ;;  %474 = vperm.xlu0 %1025, %v1375_v44  }
  0x6e   : > { %489 = vperm.xlu1 %1026, %v1382_v45   ;;  %484 = vperm.xlu0 %1025, %v1387_v46  }
  0x72   : > { %499 = vperm.xlu1 %1026, %v1394_v47   ;;  %494 = vperm.xlu0 %1025, %v1399_v48  }
  0x76   : > { %536 = vrot.lane.b32.xlu1 %v1250_v17, %s1113_s28  ;;  %534 = vrot.lane.b32.xlu0 %v1253_v18, %s1113_s28 }
  0x77   : > { %1028 = vset.pattern.permute.xlu1 %v1114_v49  ;;  %1027 = vset.pattern.permute.xlu0 %v1114_v49 }
  0x7a   : > { %540 = vrot.lane.b32.xlu1 %v1258_v19, %s1113_s28  ;;  %538 = vrot.lane.b32.xlu0 %v1261_v20, %s1113_s28 }
  0x7e   : > { %544 = vrot.lane.b32.xlu1 %v1266_v21, %s1113_s28  ;;  %542 = vrot.lane.b32.xlu0 %v1269_v22, %s1113_s28 }
  0x82   : > { %548 = vrot.lane.b32.xlu1 %v1274_v23, %s1113_s28  ;;  %546 = vrot.lane.b32.xlu0 %v1277_v24, %s1113_s28 }
  0x86   : > { %552 = vrot.lane.b32.xlu1 %v1282_v25, %s1113_s28  ;;  %550 = vrot.lane.b32.xlu0 %v1285_v26, %s1113_s28 }
  0x8a   : > { %556 = vrot.lane.b32.xlu1 %v1290_v27, %s1113_s28  ;;  %554 = vrot.lane.b32.xlu0 %v1293_v28, %s1113_s28 }
  0x8e   : > { %560 = vrot.lane.b32.xlu1 %v1298_v29, %s1113_s28  ;;  %558 = vrot.lane.b32.xlu0 %v1301_v30, %s1113_s28 }
  0x91   : > { %v1417_v50 = vpop.permute.xlu1 %289  ;;  %v1419_v51 = vpop.permute.xlu0 %279 }
  0x92   : > { %564 = vrot.lane.b32.xlu1 %v1306_v31, %s1113_s28  ;;  %562 = vrot.lane.b32.xlu0 %v1309_v32, %s1113_s28 }
  0x95   : > { %v1423_v52 = vpop.permute.xlu1 %294  ;;  %v1425_v53 = vpop.permute.xlu0 %284 }
  0x96   : > { %588 = vperm.xlu1 %1028, %v1316_v33   ;;  %584 = vperm.xlu0 %1027, %v406_v34  }
  0x99   : > { %v1428_v54 = vpop.permute.xlu1 %304  ;;  %v1430_v55 = vpop.permute.xlu0 %299 }
  0x9a   : > { %592 = vperm.xlu1 %1028, %v408_v36   ;;  %1029 = vset.pattern.permute.xlu0 %v1115_v56 }
  0x9b   : > { %680 = vperm.xlu0 %1029, %v406_v34   ;;  %v1475_v34 = vand.u32 127, %v259_v15 }
  0x9d   : > { %v1433_v57 = vpop.permute.xlu1 %314  ;;  %v1435_v58 = vpop.permute.xlu0 %309  ;;  %vm389_vm0 = vcmp.ge.s32.totalorder %v1475_v34, 2  ;;  %vm566_vm1 = vcmp.ge.s32.totalorder %v1475_v34, 1 }
  0x9e   : > { %1030 = vset.pattern.permute.xlu1 %v1115_v56 }
  0x9f   : > { %684 = vperm.xlu1 %1030, %v1316_v33   ;;  %688 = vperm.xlu0 %1029, %v408_v36  }
  0xa1   : > { %v1439_v59 = vpop.permute.xlu1 %324  ;;  %v1441_v60 = vpop.permute.xlu0 %319 }
  0xa3   : > { %1031 = vset.pattern.permute.xlu1 %v1114_v49  ;;  %692 = vperm.xlu0 %1029, %v1325_v35  }
  0xa4   : > { %596 = vperm.xlu1 %1031, %v1325_v35  }
  0xa5   : > { %v1445_v61 = vpop.permute.xlu1 %334  ;;  %v1447_v62 = vpop.permute.xlu0 %329 }
  0xa7   : > { %696 = vperm.xlu0 %1029, %v1339_v38  }
  0xa8   : > { %600 = vperm.xlu1 %1031, %v1339_v38  }
  0xa9   : > { %v1451_v63 = vpop.permute.xlu1 %344  ;;  %v1453_v0 = vpop.permute.xlu0 %339 }
  0xab   : > { %700 = vperm.xlu0 %1029, %v1334_v37  }
  0xac   : > { %604 = vperm.xlu1 %1031, %v1334_v37  }
  0xad   : > { %v1457_v1 = vpop.permute.xlu1 %354  ;;  %v1459_v2 = vpop.permute.xlu0 %349 }
  0xaf   : > { %704 = vperm.xlu0 %1029, %v1351_v40  }
  0xb0   : > { %608 = vperm.xlu1 %1031, %v1351_v40  }
  0xb1   : > { %v360_v3 = vpop.permute.xlu1 %359  ;;  %v358_v4 = vpop.permute.xlu0 %357 }
  0xb2   : > { %v391_v37 = vsel %vm389_vm0, %v360_v3, 0.0  ;;  %v390_v38 = vsel %vm389_vm0, %v358_v4, 0.0 }
  0xb3   : > { %708 = vperm.xlu0 %1029, %v1346_v39  }
  0xb4   : > { %612 = vperm.xlu1 %1031, %v1346_v39  }
  0xb5   : > { %v364_v5 = vpop.permute.xlu1 %363  ;;  %v362_v6 = vpop.permute.xlu0 %361 }
  0xb7   : > { %712 = vperm.xlu0 %1029, %v1363_v42  }
  0xb8   : > { %616 = vperm.xlu1 %1031, %v1363_v42  }
  0xb9   : > { %v368_v7 = vpop.permute.xlu1 %367  ;;  %v366_v8 = vpop.permute.xlu0 %365 }
  0xbb   : > { %716 = vperm.xlu0 %1029, %v1358_v41  }
  0xbc   : > { %620 = vperm.xlu1 %1031, %v1358_v41  }
  0xbd   : > { %v372_v9 = vpop.permute.xlu1 %371  ;;  %v370_v10 = vpop.permute.xlu0 %369 }
  0xbf   : > { %720 = vperm.xlu0 %1029, %v1375_v44  }
  0xc0   : > { %624 = vperm.xlu1 %1031, %v1375_v44  }
  0xc1   : > { %v376_v11 = vpop.permute.xlu1 %375  ;;  %v374_v12 = vpop.permute.xlu0 %373 }
  0xc3   : > { %724 = vperm.xlu0 %1029, %v1370_v43  }
  0xc4   : > { %628 = vperm.xlu1 %1031, %v1370_v43  }
  0xc5   : > { %v380_v13 = vpop.permute.xlu1 %379  ;;  %v378_v14 = vpop.permute.xlu0 %377 }
  0xc7   : > { %728 = vperm.xlu0 %1029, %v1387_v46  }
  0xc8   : > { %632 = vperm.xlu1 %1031, %v1387_v46   ;;  %v392_v46 = vsel %vm389_vm0, %v362_v6, 0.0 }
  0xc9   : > { %v384_v16 = vpop.permute.xlu1 %383  ;;  %v382_v33 = vpop.permute.xlu0 %381 }
  0xcb   : > { %732 = vperm.xlu0 %1029, %v1382_v45  }
  0xcc   : > { %636 = vperm.xlu1 %1031, %v1382_v45   ;;  %v393_v45 = vsel %vm389_vm0, %v364_v5, 0.0 }
  0xcd   : > { %v1479_v35 = vpop.permute.xlu1 %387  ;;  %v1481_v36 = vpop.permute.xlu0 %385 }
  0xcf   : > { %736 = vperm.xlu0 %1029, %v1399_v48  }
  0xd0   : > { %640 = vperm.xlu1 %1031, %v1399_v48  }
  0xd1   : > { %v430_v39 = vpop.permute.xlu1 %429  ;;  %v425_v40 = vpop.permute.xlu0 %424 }
  0xd2   : > { %v503_v41 = vmul.f32 %v430_v39, %v391_v37  ;;  %v502_v42 = vmul.f32 %v425_v40, %v390_v38 }
  0xd4   : > { %v1491_v43 = vadd.f32 %v503_v41, %v1425_v53  ;;  %v1494_v44 = vadd.f32 %v502_v42, %v1419_v51  ;;  %644 = vperm.xlu1 %1031, %v1394_v47   ;;  %v395_v51 = vsel %vm389_vm0, %v368_v7, 0.0  ;;  %v394_v53 = vsel %vm389_vm0, %v366_v8, 0.0 }
  0xd5   : > { %v440_v48 = vpop.permute.xlu1 %439  ;;  %v435_v49 = vpop.permute.xlu0 %434  ;;  %v396_v7 = vsel %vm389_vm0, %v370_v10, 0.0 }
  0xd6   : > { %v505_v3 = vmul.f32 %v440_v48, %v393_v45  ;;  %v1501_v4 = vmul.f32 %v435_v49, %v392_v46 }
  0xd8   : > { %v1504_v15 = vadd.f32 %v505_v3, %v1423_v52  ;;  %1032 = vset.pattern.permute.xlu1 %v1115_v56  ;;  %v397_v56 = vsel %vm389_vm0, %v372_v9, 0.0 }
  0xd9   : > { %740 = vperm.xlu1 %1032, %v1394_v47   ;;  %v450_v5 = vpop.permute.xlu1 %449  ;;  %v445_v6 = vpop.permute.xlu0 %444 }
  0xda   : > { %v507_v37 = vmul.f32 %v450_v5, %v395_v51  ;;  %v506_v38 = vmul.f32 %v445_v6, %v394_v53 }
  0xdc   : > { %v1513_v39 = vadd.f32 %v507_v37, %v1428_v54  ;;  %v1516_v52 = vadd.f32 %v506_v38, %v1430_v55  ;;  %v399_v54 = vsel %vm389_vm0, %v376_v11, 0.0  ;;  %v398_v55 = vsel %vm389_vm0, %v374_v12, 0.0 }
  0xdd   : > { %v460_v40 = vpop.permute.xlu1 %459  ;;  %v455_v8 = vpop.permute.xlu0 %454  ;;  %v400_v11 = vsel %vm389_vm0, %v378_v14, 0.0 }
  0xde   : > { %v509_v41 = vmul.f32 %v460_v40, %v397_v56  ;;  %v508_v47 = vmul.f32 %v455_v8, %v396_v7 }
  0xe0   : > { %v1523_v42 = vadd.f32 %v509_v41, %v1433_v57  ;;  %v1526_v45 = vadd.f32 %v508_v47, %v1435_v58  ;;  %v401_v57 = vsel %vm389_vm0, %v380_v13, 0.0 }
  0xe1   : > { %v470_v9 = vpop.permute.xlu1 %469  ;;  %v465_v46 = vpop.permute.xlu0 %464 }
  0xe2   : > { %v511_v48 = vmul.f32 %v470_v9, %v399_v54  ;;  %v510_v10 = vmul.f32 %v465_v46, %v398_v55 }
  0xe4   : > { %v1533_v49 = vadd.f32 %v511_v48, %v1439_v59  ;;  %v1536_v3 = vadd.f32 %v510_v10, %v1441_v60  ;;  %v403_v59 = vsel %vm389_vm0, %v384_v16, 0.0  ;;  %v402_v60 = vsel %vm389_vm0, %v382_v33, 0.0 }
  0xe5   : > { %v480_v58 = vpop.permute.xlu1 %479  ;;  %v475_v51 = vpop.permute.xlu0 %474 }
  0xe6   : > { %v513_v53 = vmul.f32 %v480_v58, %v401_v57  ;;  %v512_v12 = vmul.f32 %v475_v51, %v400_v11 }
  0xe8   : > { %v1543_v5 = vadd.f32 %v513_v53, %v1445_v61  ;;  %v1546_v6 = vadd.f32 %v512_v12, %v1447_v62  ;;  %v405_v61 = vsel %vm389_vm0, %v1479_v35, 0.0  ;;  %v404_v62 = vsel %vm389_vm0, %v1481_v36, 0.0 }
  0xe9   : > { %v490_v13 = vpop.permute.xlu1 %489  ;;  %v485_v37 = vpop.permute.xlu0 %484 }
  0xea   : > { %v515_v38 = vmul.f32 %v490_v13, %v403_v59  ;;  %v514_v56 = vmul.f32 %v485_v37, %v402_v60 }
  0xec   : > { %v1553_v14 = vadd.f32 %v515_v38, %v1451_v63  ;;  %v1556_v7 = vadd.f32 %v514_v56, %v1453_v0 }
  0xed   : > { %v500_v16 = vpop.permute.xlu1 %499  ;;  %v495_v33 = vpop.permute.xlu0 %494 }
  0xee   : > { %v517_v40 = vmul.f32 %v500_v16, %v405_v61  ;;  %v516_v8 = vmul.f32 %v495_v33, %v404_v62 }
  0xf0   : > { %v1565_v41 = vadd.f32 %v517_v40, %v1457_v1  ;;  %v1568_v63 = vadd.f32 %v516_v8, %v1459_v2 }
  0xf1   : > { %v537_v0 = vpop.permute.xlu1 %536  ;;  %v535_v47 = vpop.permute.xlu0 %534 }
  0xf2   : > { %v567_v59 = vsel %vm566_vm1, %v535_v47, 0.0  ;;  %v568_v37 = vsel %vm566_vm1, %v537_v0, 0.0  ;;  %v520_v0 = vadd.f32 %v1501_v4, %v1417_v50 }
  0xf5   : > { %v541_v54 = vpop.permute.xlu1 %540  ;;  %v539_v55 = vpop.permute.xlu0 %538 }
  0xf6   : > { %v569_v33 = vsel %vm566_vm1, %v539_v55, 0.0 }
  0xf9   : > { %v545_v9 = vpop.permute.xlu1 %544  ;;  %v543_v35 = vpop.permute.xlu0 %542 }
  0xfa   : > { %v571_v50 = vsel %vm566_vm1, %v543_v35, 0.0 }
  0xfd   : > { %v1570_v46 = vpop.permute.xlu1 %548  ;;  %v547_v48 = vpop.permute.xlu0 %546 }
 0x101   : > { %v1572_v36 = vpop.permute.xlu1 %552  ;;  %v1574_v10 = vpop.permute.xlu0 %550 }
 0x105   : > { %v1576_v57 = vpop.permute.xlu1 %556  ;;  %v1578_v1 = vpop.permute.xlu0 %554 }
 0x109   : > { %v1580_v58 = vpop.permute.xlu1 %560  ;;  %v1582_v2 = vpop.permute.xlu0 %558 }
 0x10d   : > { %v1584_v11 = vpop.permute.xlu1 %564  ;;  %v1586_v51 = vpop.permute.xlu0 %562 }
 0x111   : > { %v589_v53 = vpop.permute.xlu1 %588  ;;  %v585_v12 = vpop.permute.xlu0 %584 }
 0x112   : > { %v647_v60 = vmul.f32 %v585_v12, %v567_v59  ;;  %v648_v56 = vmul.f32 %v589_v53, %v568_v37 }
 0x114   : > { %v663_v61 = vadd.f32 %v647_v60, %v1494_v44  ;;  %v664_v31 = vadd.f32 %v648_v56, %v1491_v43 }
 0x115   : > { %v593_v13 = vpop.permute.xlu1 %592 }
 0x116   : > { %v681_v38 = vpop.permute.xlu0 %680  ;;  %v649_v47 = vmul.f32 %v593_v13, %v569_v33 }
 0x117   : > { %v743_v62 = vmul.f32 %v681_v38, %v1253_v18  ;;  %v570_v18 = vsel %vm566_vm1, %v541_v54, 0.0 }
 0x118   : > { %v665_v60 = vadd.f32 %v649_v47, %v520_v0 }
 0x119   : > { %v759_v16 = vadd.f32 %v743_v62, %v663_v61  ;;  %v572_v62 = vsel %vm566_vm1, %v545_v9, 0.0 }
 0x11a   : > { %v685_v40 = vpop.permute.xlu1 %684  ;;  %v689_v8 = vpop.permute.xlu0 %688 }
 0x11b   : > { %v744_v12 = vmul.f32 %v685_v40, %v1250_v17  ;;  %775 = vxpose.xlu0.b32.start [1/16] %v759_v16, 128  ;;  %v745_v44 = vmul.f32 %v689_v8, %v1261_v20  ;;  %v573_v8 = vsel %vm566_vm1, %v547_v48, 0.0 }
 0x11d   : > { %v760_v53 = vadd.f32 %v744_v12, %v664_v31  ;;  %v761_v38 = vadd.f32 %v745_v44, %v665_v60 }
 0x11e   : > { %v693_v59 = vpop.permute.xlu0 %692 }
 0x11f   : > { %v597_v55 = vpop.permute.xlu1 %596  ;;  %776 = vxpose.xlu0.b32.cont [2/16] %v760_v53, 128  ;;  %v746_v43 = vmul.f32 %v693_v59, %v1258_v19  ;;  %v574_v53 = vsel %vm566_vm1, %v1570_v46, 0.0 }
 0x120   : > { %v650_v37 = vmul.f32 %v597_v55, %v570_v18 }
 0x122   : > { %v666_v17 = vadd.f32 %v650_v37, %v1504_v15  ;;  %v697_v13 = vpop.permute.xlu0 %696 }
 0x123   : > { %v601_v31 = vpop.permute.xlu1 %600  ;;  %777 = vxpose.xlu0.b32.cont [3/16] %v761_v38, 128  ;;  %v747_v56 = vmul.f32 %v697_v13, %v1269_v22 }
 0x124   : > { %v762_v20 = vadd.f32 %v746_v43, %v666_v17  ;;  %v651_v4 = vmul.f32 %v601_v31, %v571_v50 }
 0x126   : > { %v667_v54 = vadd.f32 %v651_v4, %v1516_v52  ;;  %v701_v61 = vpop.permute.xlu0 %700 }
 0x127   : > { %v605_v16 = vpop.permute.xlu1 %604  ;;  %778 = vxpose.xlu0.b32.cont [4/16] %v762_v20, 128  ;;  %v748_v33 = vmul.f32 %v701_v61, %v1266_v21 }
 0x128   : > { %v763_v19 = vadd.f32 %v747_v56, %v667_v54  ;;  %v652_v15 = vmul.f32 %v605_v16, %v572_v62 }
 0x12a   : > { %v668_v35 = vadd.f32 %v652_v15, %v1513_v39  ;;  %v705_v40 = vpop.permute.xlu0 %704 }
 0x12b   : > { %v609_v47 = vpop.permute.xlu1 %608  ;;  %779 = vxpose.xlu0.b32.cont [5/16] %v763_v19, 128  ;;  %v749_v12 = vmul.f32 %v705_v40, %v1277_v24  ;;  %v575_v24 = vsel %vm566_vm1, %v1574_v10, 0.0 }
 0x12c   : > { %v764_v22 = vadd.f32 %v748_v33, %v668_v35  ;;  %v653_v52 = vmul.f32 %v609_v47, %v573_v8 }
 0x12e   : > { %v669_v9 = vadd.f32 %v653_v52, %v1526_v45  ;;  %v709_v0 = vpop.permute.xlu0 %708 }
 0x12f   : > { %v613_v21 = vpop.permute.xlu1 %612  ;;  %780 = vxpose.xlu0.b32.cont [6/16] %v764_v22, 128  ;;  %v750_v59 = vmul.f32 %v709_v0, %v1274_v23  ;;  %v576_v23 = vsel %vm566_vm1, %v1572_v36, 0.0  ;;  %v581_v22 = vsel %vm566_vm1, %v1586_v51, 0.0 }
 0x130   : > { %v765_v39 = vadd.f32 %v749_v12, %v669_v9  ;;  %v654_v44 = vmul.f32 %v613_v21, %v574_v53 }
 0x132   : > { %v670_v48 = vadd.f32 %v654_v44, %v1523_v42  ;;  %v713_v18 = vpop.permute.xlu0 %712 }
 0x133   : > { %v617_v60 = vpop.permute.xlu1 %616  ;;  %781 = vxpose.xlu0.b32.cont [7/16] %v765_v39, 128  ;;  %v751_v37 = vmul.f32 %v713_v18, %v1285_v26  ;;  %v577_v26 = vsel %vm566_vm1, %v1578_v1, 0.0  ;;  %v1748_v39 = vld [vmem:[#allocation5_spill] sm:$0xff] }
 0x134   : > { %v766_v45 = vadd.f32 %v750_v59, %v670_v48  ;;  %v655_v55 = vmul.f32 %v617_v60, %v575_v24 }
 0x136   : > { %v671_v46 = vadd.f32 %v655_v55, %v1536_v3  ;;  %v717_v38 = vpop.permute.xlu0 %716 }
 0x137   : > { %v621_v43 = vpop.permute.xlu1 %620  ;;  %782 = vxpose.xlu0.b32.cont [8/16] %v766_v45, 128  ;;  %v752_v13 = vmul.f32 %v717_v38, %v1282_v25  ;;  %v578_v25 = vsel %vm566_vm1, %v1576_v57, 0.0 }
 0x138   : > { %v767_v42 = vadd.f32 %v751_v37, %v671_v46  ;;  %v656_v17 = vmul.f32 %v621_v43, %v576_v23 }
 0x13a   : > { %v672_v10 = vadd.f32 %v656_v17, %v1533_v49  ;;  %v721_v50 = vpop.permute.xlu0 %720 }
 0x13b   : > { %v625_v31 = vpop.permute.xlu1 %624  ;;  %783 = vxpose.xlu0.b32.cont [9/16] %v767_v42, 128  ;;  %v753_v4 = vmul.f32 %v721_v50, %v1293_v28  ;;  %v579_v28 = vsel %vm566_vm1, %v1582_v2, 0.0 }
 0x13c   : > { %v768_v3 = vadd.f32 %v752_v13, %v672_v10  ;;  %v657_v20 = vmul.f32 %v625_v31, %v577_v26 }
 0x13e   : > { %v673_v36 = vadd.f32 %v657_v20, %v1546_v6  ;;  %v725_v56 = vpop.permute.xlu0 %724 }
 0x13f   : > { %v629_v54 = vpop.permute.xlu1 %628  ;;  %784 = vxpose.xlu0.b32.cont [10/16] %v768_v3, 128  ;;  %v754_v62 = vmul.f32 %v725_v56, %v1290_v27  ;;  %v580_v27 = vsel %vm566_vm1, %v1580_v58, 0.0 }
 0x140   : > { %v769_v49 = vadd.f32 %v753_v4, %v673_v36  ;;  %v658_v61 = vmul.f32 %v629_v54, %v578_v25 }
 0x142   : > { %v674_v1 = vadd.f32 %v658_v61, %v1543_v5  ;;  %v729_v16 = vpop.permute.xlu0 %728 }
 0x143   : > { %v633_v19 = vpop.permute.xlu1 %632  ;;  %785 = vxpose.xlu0.b32.cont [11/16] %v769_v49, 128  ;;  %v755_v33 = vmul.f32 %v729_v16, %v1301_v30 }
 0x144   : > { %v770_v6 = vadd.f32 %v754_v62, %v674_v1  ;;  %v659_v15 = vmul.f32 %v633_v19, %v579_v28 }
 0x146   : > { %v675_v57 = vadd.f32 %v659_v15, %v1556_v7  ;;  %v733_v35 = vpop.permute.xlu0 %732 }
 0x147   : > { %v637_v40 = vpop.permute.xlu1 %636  ;;  %786 = vxpose.xlu0.b32.cont [12/16] %v770_v6, 128  ;;  %v756_v47 = vmul.f32 %v733_v35, %v1298_v29  ;;  %v582_v29 = vsel %vm566_vm1, %v1584_v11, 0.0 }
 0x148   : > { %v771_v5 = vadd.f32 %v755_v33, %v675_v57  ;;  %v660_v8 = vmul.f32 %v637_v40, %v580_v27 }
 0x14a   : > { %v676_v2 = vadd.f32 %v660_v8, %v1553_v14  ;;  %v737_v30 = vpop.permute.xlu0 %736 }
 0x14b   : > { %v641_v52 = vpop.permute.xlu1 %640  ;;  %787 = vxpose.xlu0.b32.cont [13/16] %v771_v5, 128  ;;  %v757_v58 = vmul.f32 %v737_v30, %v1309_v32 }
 0x14c   : > { %v772_v7 = vadd.f32 %v756_v47, %v676_v2  ;;  %v661_v12 = vmul.f32 %v641_v52, %v581_v22 }
 0x14e   : > { %v677_v9 = vadd.f32 %v661_v12, %v1568_v63 }
 0x14f   : > { %v645_v14 = vpop.permute.xlu1 %644  ;;  %788 = vxpose.xlu0.b32.cont [14/16] %v772_v7, 128 }
 0x150   : > { %v773_v0 = vadd.f32 %v757_v58, %v677_v9  ;;  %v662_v53 = vmul.f32 %v645_v14, %v582_v29 }
 0x152   : > { %v678_v51 = vadd.f32 %v662_v53, %v1565_v41 }
 0x153   : > { %789 = vxpose.xlu0.b32.cont [15/16] %v773_v0, 128 }
 0x154   : > { %v741_v21 = vpop.permute.xlu1 %740 }
 0x155   : > { %v758_v44 = vmul.f32 %v741_v21, %v1748_v39 }
 0x157   : > { %v774_v59 = vadd.f32 %v758_v44, %v678_v51 }
 0x159   : > { %790 = vxpose.xlu0.b32.end [16/16] %v774_v59, 128 }
 0x199   : > { %v791_v32 = vpop.trf.xlu0 }
 0x19a   : > { %807 = vst [vmem:[%s1666_s4] sm:$0xff] %v791_v32 }
 0x19d   : > { %v792_v34 = vpop.trf.xlu0 }
 0x19e   : > { %808 = vst [vmem:[%s1666_s4 + $0x8] sm:$0xff] %v792_v34 }
 0x1a1   : > { %v793_v41 = vpop.trf.xlu0 }
 0x1a2   : > { %809 = vst [vmem:[%s1666_s4 + $0x10] sm:$0xff] %v793_v41 }
 0x1a5   : > { %v794_v63 = vpop.trf.xlu0 }
 0x1a6   : > { %810 = vst [vmem:[%s1666_s4 + $0x18] sm:$0xff] %v794_v63 }
 0x1a9   : > { %v795_v11 = vpop.trf.xlu0 }
 0x1aa   : > { %811 = vst [vmem:[%s1666_s4 + $0x20] sm:$0xff] %v795_v11 }
 0x1ad   : > { %v796_v48 = vpop.trf.xlu0 }
 0x1ae   : > { %812 = vst [vmem:[%s1666_s4 + $0x28] sm:$0xff] %v796_v48 }
 0x1b1   : > { %v797_v18 = vpop.trf.xlu0 }
 0x1b2   : > { %813 = vst [vmem:[%s1666_s4 + $0x30] sm:$0xff] %v797_v18 }
 0x1b5   : > { %v798_v24 = vpop.trf.xlu0 }
 0x1b6   : > { %814 = vst [vmem:[%s1666_s4 + $0x38] sm:$0xff] %v798_v24 }
 0x1b9   : > { %v799_v60 = vpop.trf.xlu0 }
 0x1ba   : > { %815 = vst [vmem:[%s1666_s4 + $0x40] sm:$0xff] %v799_v60 }
 0x1bd   : > { %v800_v45 = vpop.trf.xlu0 }
 0x1be   : > { %816 = vst [vmem:[%s1666_s4 + $0x48] sm:$0xff] %v800_v45 }
 0x1c1   : > { %v801_v55 = vpop.trf.xlu0 }
 0x1c2   : > { %817 = vst [vmem:[%s1666_s4 + $0x50] sm:$0xff] %v801_v55 }
 0x1c5   : > { %v802_v37 = vpop.trf.xlu0 }
 0x1c6   : > { %818 = vst [vmem:[%s1666_s4 + $0x58] sm:$0xff] %v802_v37 }
 0x1c9   : > { %v803_v46 = vpop.trf.xlu0 }
 0x1ca   : > { %819 = vst [vmem:[%s1666_s4 + $0x60] sm:$0xff] %v803_v46 }
 0x1cd   : > { %v804_v38 = vpop.trf.xlu0 }
 0x1ce   : > { %820 = vst [vmem:[%s1666_s4 + $0x68] sm:$0xff] %v804_v38 }
 0x1d1   : > { %v805_v23 = vpop.trf.xlu0 }
 0x1d2   : > { %821 = vst [vmem:[%s1666_s4 + $0x70] sm:$0xff] %v805_v23 }
 0x1d5   : > { %v806_v43 = vpop.trf.xlu0 }
 0x1d6   : > { %822 = vst [vmem:[%s1666_s4 + $0x78] sm:$0xff] %v806_v43 }
 0x1d7   : > { %1046 = shalt.err (!%p1043_p5)
}
 0x1d8   : > { %s1047_s21 = scalar_lea.hbm %s1688_s9, 2048  ;;  %s1051_s27 = scalar_lea.hbm %s1743_s3, 4096 }
 0x1d9   : > { %p1048_p6 = scmp.ne.s32.totalorder %s1688_s9, %s1047_s21  ;;  %p1052_p10 = scmp.lt.s32.totalorder %s1688_s9, %s1743_s3 }
 0x1da   : > { %p1053_p11 = scmp.lt.s32.totalorder %s1051_s27, %s1047_s21 }
 0x1db   : > { %p1049_p7 = pnand %p1048_p6, %p1179_p4 }
 0x1dc   : > { %p1054_p12 = por %p1053_p11, %p1052_p10 }
 0x1dd   : > { %p1050_p9 = pneg %p1049_p7 }
 0x1df   : > { %p1055_p13 = pnand %p1054_p12, %p1050_p9 }
 0x1e1   : > { %1058 = shalt.err (!%p1055_p13)
}
 0x1e2   : > { %s1117_s30 = smov 128   ;;  %s1118_s4 = smov 8  }
 0x1e3   : > { %963 = dma.vmem_to_hbm [thread:$0]  (%p1179_p4), %s1690_s6, 2048, %s1688_s9, %s1695_s10, %s1117_s30, %s1117_s30, %s1118_s4  }
 0x1e4 PF: > { %p969_p0 = scmp.ge.s32.totalorder %s1109_s17, 2  ;;  %s853_s5 = sand.u32 1, %s1089_s12  }
 0x1e5   : > { %s854_s7 = scalar_lea.sflag [#allocation3], %s853_s5 }
 0x1e6   : > { %p966_p1 = pnand %p969_p0, %p1186_p8 }
 0x1e8   : > { %p967_p2 = pneg %p966_p1 }
 0x1ea   : > { %1084 = dma.done.wait (%p967_p2), %s854_s7, 2048  }
 0x1eb   : > { %1086 = vsyncadd (%p967_p2), %s854_s7, 4294965248  ;;  %s16_s17 = sadd.s32 1, %s1109_s17   ;;  %s1749_s12 = smov %s1093_s13 }
 0x1ec   : > { %p13_p3 = scmp.ge.s32.totalorder %s16_s17, 4   ;;  %s1750_s13 = smov %s1097_s14 }
 0x1ed   : > { %s1751_s14 = smov %s1192_s25  ;;  %s1752_s15 = smov %s1105_s16 }
 0x1ee   : > { %s1753_s16 = smov %s1755_s20  ;;  %15 = sbr.rel (!%p13_p3) target bundleno = 4 (0x4), region = 73 }
 0x1f3   :  { %859 = vsyncpa [#allocation3], 1 }
 0x1f4   :  { %861 = vsyncpa [#allocation3 + $0x1], 1 }

</bundles_post_ra>
